<compile_context>
chip_gen: v7x
topology: tpu7x:2x2x1
jax: 0.10.0
libtpu: 0.0.40
codegen_flags: <defaults>
</compile_context>

<pallas_src>
import functools

import jax
import jax.numpy as jnp
from jax.experimental import pallas as pl
from jax.experimental.pallas import tpu as pltpu

_MIB = 1024 * 1024
_DEFAULT_TILE_BYTES = 4 * _MIB          # per HW tile, all generations


# ------------------------------ kernels --------------------------------------


def _fused_kernel(x_ref, w1_ref, b1_ref, w2_ref, b2_ref, o_ref, *, inv_hw):
    """Whole-sample SE: pool -> fc1 -> LeakyReLU(0.2) -> fc2 -> sigmoid -> scale.

    x_ref block: (1, C, HW) -- the full sample resident in VMEM, so x is read
    from HBM exactly once per forward.
    """
    xf = x_ref[0].astype(jnp.float32)                        # (C, HW)
    avg = jnp.sum(xf, axis=-1, keepdims=True) * inv_hw       # (C, 1)
    h = jnp.dot(w1_ref[...], avg, preferred_element_type=jnp.float32) + b1_ref[...]
    h = jnp.where(h >= 0.0, h, 0.2 * h)                      # LeakyReLU(0.2)
    s = jnp.dot(w2_ref[...], h, preferred_element_type=jnp.float32) + b2_ref[...]
    g = jax.nn.sigmoid(s)                                    # (C, 1) f32
    o_ref[0] = (xf * g).astype(o_ref.dtype)


def _pool_excite_kernel(x_ref, w1_ref, b1_ref, w2_ref, b2_ref, g_ref, acc_ref,
                        *, inv_hw, hw, hw_tile):
    """Tiled pooling with the excitation folded into the tail of the reduction."""
    t = pl.program_id(1)

    @pl.when(t == 0)
    def _():
        acc_ref[...] = jnp.zeros_like(acc_ref)

    xv = x_ref[0].astype(jnp.float32)                        # (C, hw_tile)
    c = xv.shape[0]

    # Mask the padded lanes of the final partial tile (HW % hw_tile != 0).
    if hw % hw_tile != 0:
        lane = jax.lax.broadcasted_iota(jnp.int32, xv.shape, 1)
        xv = jnp.where(t * hw_tile + lane < hw, xv, 0.0)

    if hw_tile % 128 == 0:
        # Lane-dense accumulation: per-lane partial sums on the VPU (lane-
        # aligned slices are free); the single cross-lane (XLU) reduce happens
        # once, on the last tile.
        k = hw_tile // 128
        part = xv[:, 0:128]
        for i in range(1, k):
            part = part + xv[:, i * 128:(i + 1) * 128]
    else:
        # hw_tile == hw < 128 (single tiny tile per sample): reduce now and
        # deposit the column sum into lane 0 of the lane-dense accumulator.
        colsum = jnp.sum(xv, axis=-1, keepdims=True)          # (C, 1)
        lane = jax.lax.broadcasted_iota(jnp.int32, (c, 128), 1)
        part = jnp.where(lane == 0, colsum, 0.0)
    acc_ref[...] += part

    @pl.when(t == pl.num_programs(1) - 1)
    def _():
        avg = jnp.sum(acc_ref[...], axis=-1, keepdims=True) * inv_hw   # (C, 1)
        h = jnp.dot(w1_ref[...], avg, preferred_element_type=jnp.float32) + b1_ref[...]
        h = jnp.where(h >= 0.0, h, 0.2 * h)
        s = jnp.dot(w2_ref[...], h, preferred_element_type=jnp.float32) + b2_ref[...]
        g_ref[0] = jax.nn.sigmoid(s).astype(g_ref.dtype)


def _scale_kernel(x_ref, g_ref, o_ref):
    # Streaming multiply; gate (C, 1) broadcast over lanes.  The partial tail
    # block (HW % hw_tile != 0) is masked by Pallas on store.
    o_ref[0] = x_ref[0] * g_ref[0]


# ------------------------------ wrapper ---------------------------------------


def _vmem_caps():
    """Per-generation fused-path budget and scoped-VMEM cap."""
    try:
        phys = pltpu.get_tpu_info().vmem_capacity_bytes
    except Exception:
        phys = 64 * _MIB
    if phys >= 96 * _MIB:                    # v5e / v6e: 128 MiB physical VMEM
        return {"fused_budget": 80 * _MIB, "fused_cap": 96 * _MIB}
    return {"fused_budget": 26 * _MIB, "fused_cap": 40 * _MIB}   # v7x / unknown


def _pick_hw_tile(hw, c, itemsize, tile_bytes):
    """128-multiple lane tile (<= hw) whose (C, tile) block fits the budget."""
    if hw < 128:
        return hw                            # full-extent block: always legal
    max_lanes = max(128, min(8192, (tile_bytes // max(1, c * itemsize)) // 128 * 128))
    return min(max_lanes, (hw // 128) * 128)


def _se_fused(x, w1, b1c, w2, b2c, *, hw, fused_est, caps):
    N, C, _ = x.shape
    Cr = w1.shape[0]
    vmem_limit = int(max(32 * _MIB, min(caps["fused_cap"], fused_est + 8 * _MIB)))
    return pl.pallas_call(
        functools.partial(_fused_kernel, inv_hw=1.0 / hw),
        out_shape=jax.ShapeDtypeStruct((N, C, hw), x.dtype),
        grid_spec=pltpu.PrefetchScalarGridSpec(
            num_scalar_prefetch=0,
            grid=(N,),
            in_specs=[
                pl.BlockSpec((1, C, hw), lambda n: (n, 0, 0)),
                pl.BlockSpec((Cr, C), lambda n: (0, 0)),
                pl.BlockSpec((Cr, 1), lambda n: (0, 0)),
                pl.BlockSpec((C, Cr), lambda n: (0, 0)),
                pl.BlockSpec((C, 1), lambda n: (0, 0)),
            ],
            out_specs=pl.BlockSpec((1, C, hw), lambda n: (n, 0, 0)),
        ),
        # Samples are split across the two v7x TensorCores (single TC on
        # v5e/v6e).  At N == 1 one v7x core idles; acceptable for this module.
        compiler_params=pltpu.CompilerParams(
            dimension_semantics=("parallel",),
            vmem_limit_bytes=vmem_limit),
    )(x, w1, b1c, w2, b2c)


def _se_tiled(x, w1, b1c, w2, b2c, *, hw, itemsize, tile_bytes):
    N, C, _ = x.shape
    Cr = w1.shape[0]
    hw_tile = _pick_hw_tile(hw, C, itemsize, tile_bytes)
    n_hw = pl.cdiv(hw, hw_tile)

    # Pass 1: tiled pooling + excitation tail -> per-sample gate (N, C, 1).
    gate = pl.pallas_call(
        functools.partial(_pool_excite_kernel, inv_hw=1.0 / hw, hw=hw,
                          hw_tile=hw_tile),
        out_shape=jax.ShapeDtypeStruct((N, C, 1), x.dtype),
        grid_spec=pltpu.PrefetchScalarGridSpec(
            num_scalar_prefetch=0,
            grid=(N, n_hw),
            in_specs=[
                pl.BlockSpec((1, C, hw_tile), lambda n, t: (n, 0, t)),
                pl.BlockSpec((Cr, C), lambda n, t: (0, 0)),
                pl.BlockSpec((Cr, 1), lambda n, t: (0, 0)),
                pl.BlockSpec((C, Cr), lambda n, t: (0, 0)),
                pl.BlockSpec((C, 1), lambda n, t: (0, 0)),
            ],
            out_specs=pl.BlockSpec((1, C, 1), lambda n, t: (n, 0, 0)),
            scratch_shapes=[pltpu.VMEM((C, 128), jnp.float32)],
        ),
        compiler_params=pltpu.CompilerParams(
            dimension_semantics=("parallel", "arbitrary"),
            vmem_limit_bytes=32 * _MIB),
    )(x, w1, b1c, w2, b2c)

    # Pass 2: lane-dense streaming scale.
    return pl.pallas_call(
        _scale_kernel,
        out_shape=jax.ShapeDtypeStruct((N, C, hw), x.dtype),
        grid_spec=pltpu.PrefetchScalarGridSpec(
            num_scalar_prefetch=0,
            grid=(N, n_hw),
            in_specs=[
                pl.BlockSpec((1, C, hw_tile), lambda n, t: (n, 0, t)),
                pl.BlockSpec((1, C, 1), lambda n, t: (n, 0, 0)),
            ],
            out_specs=pl.BlockSpec((1, C, hw_tile), lambda n, t: (n, 0, t)),
        ),
        compiler_params=pltpu.CompilerParams(
            dimension_semantics=("parallel", "parallel"),
            vmem_limit_bytes=32 * _MIB),
    )(x, gate)


@functools.partial(jax.jit, static_argnames=("force_tiled", "tile_bytes"))
def se_module(x_nchw, w1, b1, w2, b2, force_tiled=False, tile_bytes=None):
    """SEModule forward.

    x_nchw: (N, C, H, W).  PyTorch 1x1-conv weight layouts:
      w1: (C//r, C), b1: (C//r,), w2: (C, C//r), b2: (C,).
    """
    N, C, H, W = x_nchw.shape
    Cr = w1.shape[0]
    HW = H * W
    itemsize = x_nchw.dtype.itemsize

    x = x_nchw.reshape(N, C, HW)            # contiguous view of NCHW: no transpose
    b1c = b1.reshape(Cr, 1).astype(jnp.float32)
    b2c = b2.reshape(C, 1).astype(jnp.float32)

    if tile_bytes is None:
        tile_bytes = _DEFAULT_TILE_BYTES
    caps = _vmem_caps()

    # Fused-path resident estimate: in + out double-buffered in the input dtype
    # plus ~2 f32-sized temporaries for the f32 math, plus slack.
    fused_est = 4 * C * HW * itemsize + 8 * C * HW + 2 * _MIB
    if (not force_tiled) and fused_est <= caps["fused_budget"]:
        out = _se_fused(x, w1, b1c, w2, b2c, hw=HW, fused_est=fused_est, caps=caps)
    else:
        out = _se_tiled(x, w1, b1c, w2, b2c, hw=HW, itemsize=itemsize,
                        tile_bytes=tile_bytes)
    return out.reshape(N, C, H, W)


def se_module_ref(x_nchw, w1, b1, w2, b2):
    """Pure-JAX reference mirroring the PyTorch forward."""
    avg = jnp.mean(x_nchw, axis=(2, 3))                     # (N, C)
    h = avg @ w1.T + b1                                     # (N, Cr)
    h = jnp.where(h >= 0.0, h, 0.2 * h)                     # LeakyReLU(0.2)
    s = jax.nn.sigmoid(h @ w2.T + b2)                       # (N, C)
    return x_nchw * s[:, :, None, None]


if __name__ == "__main__":
    # Shapes consistent with SEModule(channels=32, reduction=16)
    N, C, H, W = 2, 32, 8, 8
    reduction = 16
    Cr = max(1, C // reduction)

    key = jax.random.PRNGKey(0)
    kx, k1, kb1, k2, kb2 = jax.random.split(key, 5)

    x = jax.random.normal(kx, (N, C, H, W), dtype=jnp.float32)
    # fc1/fc2 are 1x1 convs == dense layers; PyTorch (out, in) weight layout.
    w1 = jax.random.normal(k1, (Cr, C), dtype=jnp.float32) * (1.0 / jnp.sqrt(C))
    b1 = jax.random.normal(kb1, (Cr,), dtype=jnp.float32) * 0.1
    w2 = jax.random.normal(k2, (C, Cr), dtype=jnp.float32) * (1.0 / jnp.sqrt(Cr))
    b2 = jax.random.normal(kb2, (C,), dtype=jnp.float32) * 0.1

    # Primary fused path (whole (C, HW) slab resident in VMEM).
    out = jax.block_until_ready(se_module(x, w1, b1, w2, b2))
    ref = se_module_ref(x, w1, b1, w2, b2)
    assert out.shape == (N, C, H, W)
    assert jnp.allclose(out, ref, atol=1e-5, rtol=1e-5), "fused path mismatch"

    # Tiled fallback path with a masked partial HW tile (14*14 = 196 lanes,
    # hw_tile = 128 -> second tile has 68 valid lanes).
    x2 = jax.random.normal(kx, (N, C, 14, 14), dtype=jnp.float32)
    out2 = jax.block_until_ready(
        se_module(x2, w1, b1, w2, b2, force_tiled=True, tile_bytes=16 * 1024))
    ref2 = se_module_ref(x2, w1, b1, w2, b2)
    assert out2.shape == (N, C, 14, 14)
    assert jnp.allclose(out2, ref2, atol=1e-5, rtol=1e-5), "tiled path mismatch"

    print("KERNEL_OK")
</pallas_src>

<mosaic_0001>
module attributes {stable_mosaic.version = 11 : i64} {
  func.func @_fused_kernel(%arg0: i32, %arg1: memref<1x32x64xf32, #tpu.memory_space<vmem>>, %arg2: memref<2x32xf32, #tpu.memory_space<vmem>>, %arg3: memref<2x1xf32, #tpu.memory_space<vmem>>, %arg4: memref<32x2xf32, #tpu.memory_space<vmem>>, %arg5: memref<32x1xf32, #tpu.memory_space<vmem>>, %arg6: memref<1x32x64xf32, #tpu.memory_space<vmem>>) attributes {dimension_semantics = [#tpu.dimension_semantics<parallel>], iteration_bounds = array<i64: 2>, scalar_prefetch = 0 : i64, scratch_operands = 0 : i64, tpu.core_type = #tpu.core_type<tc>, window_params = [{transform_indices = @transform_0, window_bounds = array<i64: 1, 32, 64>}, {pipeline_mode = #tpu.pipeline_mode<synchronous>, transform_indices = @transform_1, window_bounds = array<i64: 2, 32>}, {pipeline_mode = #tpu.pipeline_mode<synchronous>, transform_indices = @transform_2, window_bounds = array<i64: 2, 1>}, {pipeline_mode = #tpu.pipeline_mode<synchronous>, transform_indices = @transform_3, window_bounds = array<i64: 32, 2>}, {pipeline_mode = #tpu.pipeline_mode<synchronous>, transform_indices = @transform_4, window_bounds = array<i64: 32, 1>}, {transform_indices = @transform_5, window_bounds = array<i64: 1, 32, 64>}]} {
    %c0 = arith.constant 0 : index
    %c0_0 = arith.constant 0 : index
    %c0_1 = arith.constant 0 : index
    %0 = vector.load %arg1[%c0, %c0_0, %c0_1] : memref<1x32x64xf32, #tpu.memory_space<vmem>>, vector<1x32x64xf32>
    %1 = vector.shape_cast %0 : vector<1x32x64xf32> to vector<32x64xf32>
    %cst = arith.constant dense<0.000000e+00> : vector<32xf32>
    %2 = vector.multi_reduction <add>, %1, %cst [1] : vector<32x64xf32> to vector<32xf32>
    %3 = vector.shape_cast %2 : vector<32xf32> to vector<32x1xf32>
    %cst_2 = arith.constant 1.562500e-02 : f32
    %4 = vector.broadcast %cst_2 : f32 to vector<32x1xf32>
    %5 = arith.mulf %3, %4 : vector<32x1xf32>
    %c0_3 = arith.constant 0 : index
    %c0_4 = arith.constant 0 : index
    %6 = vector.load %arg2[%c0_3, %c0_4] : memref<2x32xf32, #tpu.memory_space<vmem>>, vector<2x32xf32>
    %cst_5 = arith.constant dense<0.000000e+00> : vector<2x1xf32>
    %7 = tpu.matmul %6, %5, %cst_5 {dimension_numbers = #tpu.dot_dimension_numbers<[1], [0], [0], [1], [0, 0, 1, 1], [], []>} : vector<2x32xf32>, vector<32x1xf32>, vector<2x1xf32> -> vector<2x1xf32>
    %c0_6 = arith.constant 0 : index
    %c0_7 = arith.constant 0 : index
    %8 = vector.load %arg3[%c0_6, %c0_7] : memref<2x1xf32, #tpu.memory_space<vmem>>, vector<2x1xf32>
    %9 = arith.addf %7, %8 : vector<2x1xf32>
    %cst_8 = arith.constant 0.000000e+00 : f32
    %10 = vector.broadcast %cst_8 : f32 to vector<2x1xf32>
    %11 = arith.cmpf oge, %9, %10 : vector<2x1xf32>
    %cst_9 = arith.constant 2.000000e-01 : f32
    %12 = vector.broadcast %cst_9 : f32 to vector<2x1xf32>
    %13 = arith.mulf %12, %9 : vector<2x1xf32>
    %14 = arith.select %11, %9, %13 : vector<2x1xi1>, vector<2x1xf32>
    %c0_10 = arith.constant 0 : index
    %c0_11 = arith.constant 0 : index
    %15 = vector.load %arg4[%c0_10, %c0_11] : memref<32x2xf32, #tpu.memory_space<vmem>>, vector<32x2xf32>
    %cst_12 = arith.constant dense<0.000000e+00> : vector<32x1xf32>
    %16 = tpu.matmul %15, %14, %cst_12 {dimension_numbers = #tpu.dot_dimension_numbers<[1], [0], [0], [1], [0, 0, 1, 1], [], []>} : vector<32x2xf32>, vector<2x1xf32>, vector<32x1xf32> -> vector<32x1xf32>
    %c0_13 = arith.constant 0 : index
    %c0_14 = arith.constant 0 : index
    %17 = vector.load %arg5[%c0_13, %c0_14] : memref<32x1xf32, #tpu.memory_space<vmem>>, vector<32x1xf32>
    %18 = arith.addf %16, %17 : vector<32x1xf32>
    %19 = arith.negf %18 : vector<32x1xf32>
    %20 = math.exp %19 : vector<32x1xf32>
    %cst_15 = arith.constant 1.000000e+00 : f32
    %21 = vector.broadcast %cst_15 : f32 to vector<32x1xf32>
    %22 = arith.addf %21, %20 : vector<32x1xf32>
    %23 = arith.divf %21, %22 : vector<32x1xf32>
    %24 = vector.broadcast %23 : vector<32x1xf32> to vector<32x64xf32>
    %25 = arith.mulf %1, %24 : vector<32x64xf32>
    %c0_16 = arith.constant 0 : index
    %c0_17 = arith.constant 0 : index
    %c0_18 = arith.constant 0 : index
    %26 = vector.load %arg6[%c0_16, %c0_17, %c0_18] : memref<1x32x64xf32, #tpu.memory_space<vmem>>, vector<1x32x64xf32>
    %27 = vector.shape_cast %26 : vector<1x32x64xf32> to vector<32x64xf32>
    %28 = vector.shape_cast %25 : vector<32x64xf32> to vector<1x32x64xf32>
    tpu.vector_store %arg6[%c0_16, %c0_17, %c0_18], %28 {strides = array<i32>} : memref<1x32x64xf32, #tpu.memory_space<vmem>>, vector<1x32x64xf32>,
    return
  }
  func.func @transform_0(%arg0: i32) -> (i32, i32, i32) {
    %c0_i32 = arith.constant 0 : i32
    %c0_i32_0 = arith.constant 0 : i32
    %c0_i32_1 = arith.constant 0 : i32
    return %arg0, %c0_i32, %c0_i32_0 : i32, i32, i32
  }
  func.func @transform_1(%arg0: i32) -> (i32, i32) {
    %c0_i32 = arith.constant 0 : i32
    %c0_i32_0 = arith.constant 0 : i32
    %c0_i32_1 = arith.constant 0 : i32
    return %c0_i32, %c0_i32_0 : i32, i32
  }
  func.func @transform_2(%arg0: i32) -> (i32, i32) {
    %c0_i32 = arith.constant 0 : i32
    %c0_i32_0 = arith.constant 0 : i32
    %c0_i32_1 = arith.constant 0 : i32
    return %c0_i32, %c0_i32_0 : i32, i32
  }
  func.func @transform_3(%arg0: i32) -> (i32, i32) {
    %c0_i32 = arith.constant 0 : i32
    %c0_i32_0 = arith.constant 0 : i32
    %c0_i32_1 = arith.constant 0 : i32
    return %c0_i32, %c0_i32_0 : i32, i32
  }
  func.func @transform_4(%arg0: i32) -> (i32, i32) {
    %c0_i32 = arith.constant 0 : i32
    %c0_i32_0 = arith.constant 0 : i32
    %c0_i32_1 = arith.constant 0 : i32
    return %c0_i32, %c0_i32_0 : i32, i32
  }
  func.func @transform_5(%arg0: i32) -> (i32, i32, i32) {
    %c0_i32 = arith.constant 0 : i32
    %c0_i32_0 = arith.constant 0 : i32
    %c0_i32_1 = arith.constant 0 : i32
    return %arg0, %c0_i32, %c0_i32_0 : i32, i32, i32
  }
}

</mosaic_0001>

<bundles_post_ra>
// kernel: se_module.1
= control target key start
LH: loop header
LB: loop body
LE: loop exit
PB: predicated region body
PF: predicated region fallthrough
CT: control target
= control target key end

     0   :  { %s672_s18 = smov 0   ;;  %s754_s0 = inlined_call_operand.vmem [shape: f32[2,32,64], index: 0, kind: input, shape index: {}]   ;;  %s755_s1 = inlined_call_operand.vmem [shape: f32[2,32], index: 1, kind: input, shape index: {}]   ;;  %s756_s2 = inlined_call_operand.vmem [shape: f32[2,1], index: 2, kind: input, shape index: {}]   ;;  %s757_s3 = inlined_call_operand.vmem [shape: f32[32,2], index: 3, kind: input, shape index: {}]   ;;  %s758_s4 = inlined_call_operand.vmem [shape: f32[32,1], index: 4, kind: input, shape index: {}]   ;;  %s759_s5 = inlined_call_operand.vmem [shape: f32[2,32,64], index: 5, kind: output, shape index: {}]  }
   0x1 LB: > { %s542_s19 = sadd.s32 4294967295, %s636_s18   ;;  %p546_p0 = scmp.ge.s32.totalorder %s636_s18, 1  ;;  %s636_s18 = sphi %s672_s18, %s15_s18  }
   0x2   : > { %p187_p1 = scmp.lt.s32.totalorder %s636_s18, 3 }
   0x4   : > { %p188_p2 = pnand %p546_p0, %p187_p1 }
   0x5   : > { %p215_p3 = scmp.lt.s32.totalorder (!%p188_p2), %s542_s19, 1  ;;  %vm229_vm0 = vcmask (!%p188_p2), 523264   ;;  %v638_v8 = vmov (!%p188_p2), 0.0|0.0   ;;  %vm639_vm1 = vmmov (!%p188_p2), 0   ;;  %v640_v9 = vmov (!%p188_p2), 0.0   ;;  %v325_v21 = vld [vmem:[%s757_s3] sm:$0xff] (!%p188_p2) }
   0x6   : > { %191 = sbr.rel (%p188_p2) target bundleno = 774 (0x306), region = 40  ;;  %594 = vmatprep.subr.bf16.mxu0 (!%p188_p2), %v638_v8  ;;  %583 = vmatprep.mubr.msk.f32.mxu0 (!%p188_p2), %vm639_vm1, %v640_v9  ;;  %v246_v20 = vld [vmem:[%s755_s1] sm:$0x3] (!%p188_p2)  ;;  %vm248_vm2 = vcmask (!%p188_p2), 261120   ;;  %vm333_vm3 = vcmask (!%p188_p2), 15360   ;;  %vm346_vm5 = vcmask (!%p188_p2), 1041408  }
   0x7   : > { %588 = vmatprep.mubr.msk.f32.mxu1 (!%p188_p2), %vm333_vm3, %v325_v21  ;;  %v247_v22 = vld [vmem:[%s756_s2] sm:$0x3] (!%p188_p2)  ;;  %v326_v28 = vld [vmem:[%s757_s3 + $0x8] sm:$0xff] (!%p188_p2)  ;;  %v327_v29 = vld [vmem:[%s757_s3 + $0x10] sm:$0xff] (!%p188_p2)  ;;  %v641_v31 = vmov (!%p188_p2), 0  }
   0x8   : > { %v328_v30 = vld [vmem:[%s757_s3 + $0x18] sm:$0xff] (!%p188_p2)  ;;  %613 = vset.pattern.permute.xlu1 (!%p188_p2), %v641_v31  ;;  %612 = vset.pattern.permute.xlu0 (!%p188_p2), %v641_v31  ;;  %v330_v32 = vld [vmem:[%s758_s4 + $0x8] sm:$0xff] (!%p188_p2)  ;;  %v329_v33 = vld [vmem:[%s758_s4] sm:$0xff] (!%p188_p2) }
   0x9   : > { %v332_v38 = vld [vmem:[%s758_s4 + $0x18] sm:$0xff] (!%p188_p2)  ;;  %v331_v40 = vld [vmem:[%s758_s4 + $0x10] sm:$0xff] (!%p188_p2) }
   0xd   : > { %s761_s19 = smov (!%p215_p3, %s542_s19), 1 }
   0xe   : > { %s563_s20 = sshll.u32 %s761_s19, 5 }
   0xf   : > { %s219_s23 = scalar_lea.vmem %s754_s0, %s563_s20  ;;  %s224_s24 = scalar_lea.vmem %s759_s5, %s563_s20 }
  0x10   : > { %v688_v0 = vld [vmem:[%s219_s23 + $0x10] sm:$0xff]  ;;  %v690_v1 = vld [vmem:[%s219_s23] sm:$0xff]  ;;  %v692_v2 = vld [vmem:[%s219_s23 + $0x18] sm:$0xff] }
  0x11   : > { %v236_v3 = vsel %vm229_vm0, %v688_v0, 0.0  ;;  %v230_v4 = vsel %vm229_vm0, %v690_v1, 0.0  ;;  %v698_v5 = vld [vmem:[%s219_s23 + $0x8] sm:$0xff]  ;;  %v239_v6 = vsel %vm229_vm0, %v692_v2, 0.0 }
  0x12   : > { %237 = vadd.xlane.f32.xlu1 %v236_v3  ;;  %231 = vadd.xlane.f32.xlu0 %v230_v4  ;;  %v233_v7 = vsel %vm229_vm0, %v698_v5, 0.0 }
  0x16   : > { %240 = vadd.xlane.f32.xlu1 %v239_v6  ;;  %234 = vadd.xlane.f32.xlu0 %v233_v7 }
  0x9f   : > { %v238_v10 = vpop.xlane.xlu1 %237  ;;  %v232_v11 = vpop.xlane.xlu0 %231 }
  0xa0   : > { %v242_v14 = vmul.f32 0.015625, %v232_v11  ;;  %v244_v16 = vmul.f32 0.015625, %v238_v10 }
  0xa3   : > { %v241_v12 = vpop.xlane.xlu1 %240  ;;  %v235_v13 = vpop.xlane.xlu0 %234 }
  0xa4   : > { %v243_v15 = vmul.f32 0.015625, %v235_v13  ;;  %v245_v17 = vmul.f32 0.015625, %v241_v12 }
  0xa6   : > { %v595_v18 = vpack.c.bf16 %v243_v15, %v242_v14  ;;  %v598_v19 = vpack.c.bf16 %v245_v17, %v244_v16 }
  0xa8   : > { %596 = vmatpush3.bf16.msra.mxu0 %v595_v18 }
  0xa9   : > { %597 = vmatprep.subr.bf16.mxu0 %v638_v8 }
  0xac   : > { %599 = vmatpush3.bf16.msra.mxu0 %v598_v19 }
  0xaf   : > { %584 = vmatmul.mubr.msk.f32.vlgmr.msra.gmra.mrb[0].mxu0 %vm248_vm2, %v246_v20 }
 0x182   : > { %v318_v23 = vpop.f32.mrb[0].mxu0 }
 0x183   : > { %v319_v24 = vadd.f32 %v318_v23, %v247_v22  ;;  %v585_v25 = vpop.f32.mrb[1].mxu0 }
 0x185   : > { %vm322_vm4 = vcmp.ge.f32.partialorder %v319_v24, 0.0  ;;  %v323_v26 = vmul.f32 0.2, %v319_v24 }
 0x187   : > { %v324_v27 = vsel %vm322_vm4, %v319_v24, %v323_v26 }
 0x188   : > { %586 = vmatprep.subr.msk.mxu1 %vm346_vm5, %v324_v27 }
 0x189   : > { %587 = vmatpush3.msk.msra.mxu1 %vm346_vm5, %v324_v27 }
 0x18a   : > { %589 = vmatmul.mubr.msk.f32.vlgmr.msra.gmra.mrb[0].mxu1 %vm333_vm3, %v326_v28 }
 0x18b   : > { %591 = vmatprep.mubr.msk.f32.mxu1 %vm333_vm3, %v327_v29 }
 0x18e   : > { %592 = vmatmul.mubr.msk.f32.gmra.mrb[2].mxu1 %vm333_vm3, %v328_v30 }
 0x25d   : > { %v590_v34 = vpop.f32.mrb[0].mxu1 }
 0x25e   : > { %v422_v35 = vadd.f32 %v590_v34, %v330_v32  ;;  %v416_v36 = vpop.f32.mrb[1].mxu1 }
 0x25f   : > { %v417_v37 = vadd.f32 %v416_v36, %v329_v33 }
 0x260   : > { %v558_v39 = vmul.f32 -1.442695, %v422_v35 }
 0x261   : > { %v557_v41 = vmul.f32 -1.442695, %v417_v37  ;;  %v593_v42 = vpop.f32.mrb[2].mxu1 }
 0x262   : > { %614 = vpow2.f32 %v558_v39  ;;  %v432_v43 = vadd.f32 %v593_v42, %v332_v38  ;;  %v426_v44 = vpop.f32.mrb[3].mxu1 }
 0x263   : > { %616 = vpow2.f32 %v557_v41  ;;  %v427_v45 = vadd.f32 %v426_v44, %v331_v40 }
 0x264   : > { %v560_v46 = vmul.f32 -1.442695, %v432_v43 }
 0x265   : > { %v559_v47 = vmul.f32 -1.442695, %v427_v45 }
 0x266   : > { %618 = vpow2.f32 %v560_v46 }
 0x267   : > { %620 = vpow2.f32 %v559_v47 }
 0x26c   : > { %v615_v48 = vpop.eup %614 }
 0x26d   : > { %v617_v49 = vpop.eup %616  ;;  %v448_v50 = vadd.f32 1.0, %v615_v48 }
 0x26e   : > { %v447_v51 = vadd.f32 1.0, %v617_v49 }
 0x26f   : > { %622 = vrcp.f32 %v448_v50 }
 0x270   : > { %v619_v52 = vpop.eup %618  ;;  %624 = vrcp.f32 %v447_v51 }
 0x271   : > { %v621_v53 = vpop.eup %620  ;;  %v450_v55 = vadd.f32 1.0, %v619_v52 }
 0x272   : > { %v449_v54 = vadd.f32 1.0, %v621_v53 }
 0x274   : > { %626 = vrcp.f32 %v449_v54 }
 0x275   : > { %628 = vrcp.f32 %v450_v55 }
 0x279   : > { %v623_v56 = vpop.eup %622 }
 0x27a   : > { %v625_v57 = vpop.eup %624  ;;  %466 = vperm.xlu1 %613, %v623_v56  }
 0x27b   : > { %461 = vperm.xlu0 %612, %v625_v57  }
 0x27e   : > { %v627_v58 = vpop.eup %626 }
 0x27f   : > { %471 = vperm.xlu1 %613, %v627_v58   ;;  %v629_v59 = vpop.eup %628 }
 0x283   : > { %476 = vperm.xlu1 %613, %v629_v59  }
 0x2f9   : > { %v467_v60 = vpop.permute.xlu1 %466 }
 0x2fa   : > { %v480_v61 = vmul.f32 %v467_v60, %v698_v5  ;;  %v462_v62 = vpop.permute.xlu0 %461 }
 0x2fb   : > { %v479_v63 = vmul.f32 %v462_v62, %v690_v1 }
 0x2fc   : > { %484 = vst.msk [vmem:[%s224_s24 + $0x8] sm:$0xff] %vm229_vm0, %v480_v61 }
 0x2fd   : > { %483 = vst.msk [vmem:[%s224_s24] sm:$0xff] %vm229_vm0, %v479_v63 }
 0x2fe   : > { %v472_v3 = vpop.permute.xlu1 %471 }
 0x2ff   : > { %v481_v4 = vmul.f32 %v472_v3, %v688_v0 }
 0x301   : > { %485 = vst.msk [vmem:[%s224_s24 + $0x10] sm:$0xff] %vm229_vm0, %v481_v4 }
 0x302   : > { %v477_v6 = vpop.permute.xlu1 %476 }
 0x303   : > { %v482_v7 = vmul.f32 %v477_v6, %v692_v2 }
 0x305   : > { %486 = vst.msk [vmem:[%s224_s24 + $0x18] sm:$0xff] %vm229_vm0, %v482_v7 }
 0x306 PF: > { %s15_s18 = sadd.s32 1, %s636_s18  }
 0x307   : > { %p12_p4 = scmp.ge.s32.totalorder %s15_s18, 4  }
 0x309   :  { %14 = sbr.rel (!%p12_p4) target bundleno = 1 (0x1), region = 70 }

</bundles_post_ra>
